<compile_context>
chip_gen: v7x
topology: tpu7x:2x2x1
jax: 0.10.0
libtpu: 0.0.40
codegen_flags: <defaults>
</compile_context>

<pallas_src>
import functools

import jax
import jax.numpy as jnp
from jax.experimental import pallas as pl
from jax.experimental.pallas import tpu as pltpu

BN_EPS = 1e-5


def _round_up(x, m):
    return ((x + m - 1) // m) * m


# ----------------------------- Pallas kernel ------------------------------- #

def _conv3x3_stats_kernel(x_ref, w_ref, z_ref, stat_ref):
    # x_ref:    (1, K, TP)    bf16  im2col patch tile, K = 9*Cin, spatial in lanes
    # w_ref:    (Cout, K)     bf16  resident across the whole grid
    # z_ref:    (1, Cout, TP) bf16  raw conv output, lane-dense (TP % 128 == 0)
    # stat_ref: (1, Cout, 2)  f32   per-tile [sum, sum of squares] partial BN stats
    acc = jnp.dot(w_ref[...], x_ref[0], preferred_element_type=jnp.float32)  # (Cout, TP)
    z_ref[0] = acc.astype(z_ref.dtype)
    stat_ref[0, :, 0:1] = jnp.sum(acc, axis=1, keepdims=True)
    stat_ref[0, :, 1:2] = jnp.sum(acc * acc, axis=1, keepdims=True)


def conv3x3_with_stats(patches, w_t):
    # patches: (G, K, TP) bf16, w_t: (Cout, K) bf16
    G, K, TP = patches.shape
    Cout = w_t.shape[0]
    return pl.pallas_call(
        _conv3x3_stats_kernel,
        out_shape=(
            jax.ShapeDtypeStruct((G, Cout, TP), jnp.bfloat16),
            jax.ShapeDtypeStruct((G, Cout, 2), jnp.float32),
        ),
        grid_spec=pltpu.PrefetchScalarGridSpec(
            num_scalar_prefetch=0,
            grid=(G,),
            in_specs=[
                pl.BlockSpec((1, K, TP), lambda g: (g, 0, 0)),
                pl.BlockSpec((Cout, K), lambda g: (0, 0)),      # resident weights
            ],
            out_specs=(
                pl.BlockSpec((1, Cout, TP), lambda g: (g, 0, 0)),
                pl.BlockSpec((1, Cout, 2), lambda g: (g, 0, 0)),  # packed partial stats
            ),
        ),
        compiler_params=pltpu.CompilerParams(
            dimension_semantics=("parallel",),        # splits across v7x's 2 TCs
            vmem_limit_bytes=32 * 1024 * 1024,
        ),
    )(patches, w_t)


# ------------------------------- JAX glue ---------------------------------- #

def _vmem_capacity_bytes():
    try:
        return int(pltpu.get_tpu_info().vmem_capacity_bytes)
    except Exception:
        return 64 * 1024 * 1024        # conservative (v7x per-TensorCore)


def _choose_row_tile(N, H, W, Cin, Cout):
    # Largest row tile whose (double-buffered) per-step footprint stays well under the
    # per-generation VMEM, preferring tiles that keep the parallel grid >= 2 steps
    # (v7x has 2 TensorCores; on v5e/v6e this costs nothing).
    budget = min(_vmem_capacity_bytes() // 4, 12 * 1024 * 1024)
    K = 9 * Cin

    def footprint(th):
        tp = _round_up(th * W, 128)
        return (2 * K * tp * 2                       # 2x buffered bf16 input tile
                + 2 * (Cout * tp * 2 + Cout * 2 * 4)  # 2x buffered z + stats
                + K * Cout * 2)                       # resident weights

    cands = [th for th in range(1, H + 1) if H % th == 0 and footprint(th) <= budget]
    if not cands:
        return 1
    pref = [th for th in cands if N * (H // th) >= 2]
    return max(pref) if pref else max(cands)


def _interp_matrix(out_size, in_size):
    # Bilinear interpolation matrix, align_corners=True (matches the reference module).
    if in_size == 1:
        return jnp.ones((out_size, 1), jnp.float32)
    pos = jnp.arange(out_size, dtype=jnp.float32) * (in_size - 1) / (out_size - 1)
    lo = jnp.clip(jnp.floor(pos).astype(jnp.int32), 0, in_size - 2)
    frac = pos - lo.astype(jnp.float32)
    rows = jnp.arange(out_size)
    A = jnp.zeros((out_size, in_size), jnp.float32)
    A = A.at[rows, lo].set(1.0 - frac)
    A = A.at[rows, lo + 1].add(frac)
    return A


def upsample_bilinear_align_corners(x_nhwc, scale_factor):
    N, H, W, C = x_nhwc.shape
    Ah = _interp_matrix(H * scale_factor, H)   # (Hout, H)
    Aw = _interp_matrix(W * scale_factor, W)   # (Wout, W)
    return jnp.einsum('oh,nhwc,pw->nopc', Ah, x_nhwc, Aw)


def build_im2col_tiles(x_nhwc, th, tp_pad):
    # (N, H, W, Cin) -> (N * H//th, 9*Cin, tp_pad) bf16 im2col, spatial flattened into
    # lanes so the kernel is a single K=9*Cin matmul with a lane-dense RHS/output.
    N, H, W, C = x_nhwc.shape
    nT = H // th
    xp = jnp.pad(x_nhwc.astype(jnp.bfloat16), ((0, 0), (1, 1), (1, 1), (0, 0)))
    taps = jnp.stack([xp[:, kh:kh + H, kw:kw + W, :]
                      for kh in range(3) for kw in range(3)], axis=1)   # (N,9,H,W,C)
    t = jnp.transpose(taps, (0, 1, 4, 2, 3))           # (N, 9, C, H, W)
    t = t.reshape(N, 9, C, nT, th, W)
    t = jnp.transpose(t, (0, 3, 1, 2, 4, 5))           # (N, nT, 9, C, th, W)
    patches = t.reshape(N * nT, 9 * C, th * W)
    if tp_pad > th * W:                                 # zero lanes: no effect on conv/stats
        patches = jnp.pad(patches, ((0, 0), (0, 0), (0, tp_pad - th * W)))
    return patches


def conv_bn_relu_block(x_nhwc, w, gamma, beta):
    # w: (3, 3, Cin, Cout)  ==  torch weight (Cout, Cin, 3, 3).permute(2, 3, 1, 0)
    N, H, W, Cin = x_nhwc.shape
    Cout = w.shape[-1]
    Cout_p = _round_up(Cout, 8)

    th = _choose_row_tile(N, H, W, Cin, Cout_p)
    nT = H // th
    tp = th * W
    tp_pad = _round_up(tp, 128)

    patches = build_im2col_tiles(x_nhwc, th, tp_pad)                    # (G, 9Cin, tp_pad)
    w_t = w.reshape(9 * Cin, Cout).T.astype(jnp.bfloat16)               # (Cout, 9Cin)
    if Cout_p > Cout:
        w_t = jnp.pad(w_t, ((0, Cout_p - Cout), (0, 0)))

    z, stats = conv3x3_with_stats(patches, w_t)     # z: (G, Cout_p, tp_pad) bf16

    # BN batch stats from f32 partials (lane / channel padding contributes zeros).
    count = N * H * W
    psum = jnp.sum(stats[:, :Cout, 0], axis=0)
    psumsq = jnp.sum(stats[:, :Cout, 1], axis=0)
    mean = psum / count
    var = jnp.maximum(psumsq / count - mean * mean, 0.0)   # biased var (BN train mode)
    scale = gamma * jax.lax.rsqrt(var + BN_EPS)
    shift = beta - mean * scale

    z = z[:, :Cout, :tp].reshape(N, nT, Cout, th, W)
    z = jnp.transpose(z, (0, 1, 3, 4, 2)).reshape(N, H, W, Cout)
    # BN + ReLU as plain jnp: XLA fuses it into the next layer's im2col build / the
    # final NCHW transpose (see TODOs at top for the in-kernel variant).
    return jnp.maximum(z.astype(jnp.float32) * scale + shift, 0.0)


def up_forward(x1_nchw, x2_nchw, params, scale_factor=2):
    # Matches Up.forward: x1 = upsample(x1); x = cat([x2, x1], dim=channels); conv stack.
    x1 = jnp.transpose(x1_nchw, (0, 2, 3, 1)).astype(jnp.float32)
    x2 = jnp.transpose(x2_nchw, (0, 2, 3, 1)).astype(jnp.float32)
    x1u = upsample_bilinear_align_corners(x1, scale_factor)
    x = jnp.concatenate([x2, x1u], axis=-1)                     # torch.cat([x2, x1], dim=1)

    h = conv_bn_relu_block(x, params['w1'], params['gamma1'], params['beta1'])
    h = conv_bn_relu_block(h, params['w2'], params['gamma2'], params['beta2'])
    return jnp.transpose(h, (0, 3, 1, 2))                       # back to NCHW


# --------------------------------- main ------------------------------------ #

if __name__ == "__main__":
    key = jax.random.PRNGKey(0)
    k1, k2, kw1, kw2 = jax.random.split(key, 4)

    N = 2
    C1, Hin, Win = 8, 8, 8            # x1: low-res feature map (to be upsampled)
    C2 = 8                            # x2: skip connection at full resolution
    in_channels = C1 + C2             # channels after concat = 16
    out_channels = 8
    scale_factor = 2
    Hout, Wout = Hin * scale_factor, Win * scale_factor

    x1 = jax.random.normal(k1, (N, C1, Hin, Win), jnp.float32)
    x2 = jax.random.normal(k2, (N, C2, Hout, Wout), jnp.float32)

    # Deterministic parameters (Conv2d weights; BN gamma=1, beta=0 as in PyTorch init).
    params = {
        'w1': 0.1 * jax.random.normal(kw1, (3, 3, in_channels, out_channels), jnp.float32),
        'gamma1': jnp.ones((out_channels,), jnp.float32),
        'beta1': jnp.zeros((out_channels,), jnp.float32),
        'w2': 0.1 * jax.random.normal(kw2, (3, 3, out_channels, out_channels), jnp.float32),
        'gamma2': jnp.ones((out_channels,), jnp.float32),
        'beta2': jnp.zeros((out_channels,), jnp.float32),
    }

    fwd = jax.jit(functools.partial(up_forward, scale_factor=scale_factor))
    out = jax.block_until_ready(fwd(x1, x2, params))

    assert out.shape == (N, out_channels, Hout, Wout), out.shape
    assert bool(jnp.all(jnp.isfinite(out)))
    print("KERNEL_OK")
</pallas_src>

<mosaic_0001>
module attributes {stable_mosaic.version = 11 : i64} {
  func.func private @main(%arg0: i32) attributes {dimension_semantics = [#tpu.dimension_semantics<core_parallel>], iteration_bounds = array<i64: 2>, tpu.core_type = #tpu.core_type<sc_scalar_subcore>, window_params = []} {
    return
  }
}

module attributes {stable_mosaic.version = 11 : i64} {
  func.func private @main(%arg0: i32) attributes {dimension_semantics = [#tpu.dimension_semantics<core_parallel>], iteration_bounds = array<i64: 2>, tpu.core_type = #tpu.core_type<sc_scalar_subcore>, window_params = []} {
    return
  }
}

module attributes {stable_mosaic.version = 11 : i64} {
  func.func @_conv3x3_stats_kernel(%arg0: i32, %arg1: memref<1x144x256xbf16, #tpu.memory_space<vmem>>, %arg2: memref<8x144xbf16, #tpu.memory_space<vmem>>, %arg3: memref<1x8x256xbf16, #tpu.memory_space<vmem>>, %arg4: memref<1x8x2xf32, #tpu.memory_space<vmem>>) attributes {dimension_semantics = [#tpu.dimension_semantics<parallel>], iteration_bounds = array<i64: 2>, scalar_prefetch = 0 : i64, scratch_operands = 0 : i64, tpu.core_type = #tpu.core_type<tc>, window_params = [{transform_indices = @transform_0, window_bounds = array<i64: 1, 144, 256>}, {pipeline_mode = #tpu.pipeline_mode<synchronous>, transform_indices = @transform_1, window_bounds = array<i64: 8, 144>}, {transform_indices = @transform_2, window_bounds = array<i64: 1, 8, 256>}, {transform_indices = @transform_3, window_bounds = array<i64: 1, 8, 2>}]} {
    %c0 = arith.constant 0 : index
    %c0_0 = arith.constant 0 : index
    %0 = vector.load %arg2[%c0, %c0_0] : memref<8x144xbf16, #tpu.memory_space<vmem>>, vector<8x144xbf16>
    %c0_1 = arith.constant 0 : index
    %c0_2 = arith.constant 0 : index
    %c0_3 = arith.constant 0 : index
    %1 = vector.load %arg1[%c0_1, %c0_2, %c0_3] : memref<1x144x256xbf16, #tpu.memory_space<vmem>>, vector<1x144x256xbf16>
    %2 = vector.shape_cast %1 : vector<1x144x256xbf16> to vector<144x256xbf16>
    %cst = arith.constant dense<0.000000e+00> : vector<8x256xf32>
    %3 = tpu.matmul %0, %2, %cst {dimension_numbers = #tpu.dot_dimension_numbers<[1], [0], [0], [1], [0, 0, 1, 1], [], []>} : vector<8x144xbf16>, vector<144x256xbf16>, vector<8x256xf32> -> vector<8x256xf32>
    %4 = arith.truncf %3 : vector<8x256xf32> to vector<8x256xbf16>
    %c0_4 = arith.constant 0 : index
    %c0_5 = arith.constant 0 : index
    %c0_6 = arith.constant 0 : index
    %5 = vector.load %arg3[%c0_4, %c0_5, %c0_6] : memref<1x8x256xbf16, #tpu.memory_space<vmem>>, vector<1x8x256xbf16>
    %6 = vector.shape_cast %5 : vector<1x8x256xbf16> to vector<8x256xbf16>
    %7 = vector.shape_cast %4 : vector<8x256xbf16> to vector<1x8x256xbf16>
    tpu.vector_store %arg3[%c0_4, %c0_5, %c0_6], %7 {strides = array<i32>} : memref<1x8x256xbf16, #tpu.memory_space<vmem>>, vector<1x8x256xbf16>,
    %cst_7 = arith.constant dense<0.000000e+00> : vector<8xf32>
    %8 = vector.multi_reduction <add>, %3, %cst_7 [1] : vector<8x256xf32> to vector<8xf32>
    %9 = vector.shape_cast %8 : vector<8xf32> to vector<8x1xf32>
    %c0_8 = arith.constant 0 : index
    %c0_9 = arith.constant 0 : index
    %c0_10 = arith.constant 0 : index
    %10 = vector.load %arg4[%c0_8, %c0_9, %c0_10] : memref<1x8x2xf32, #tpu.memory_space<vmem>>, vector<1x8x1xf32>
    %11 = vector.shape_cast %10 : vector<1x8x1xf32> to vector<8x1xf32>
    %12 = vector.shape_cast %9 : vector<8x1xf32> to vector<1x8x1xf32>
    tpu.vector_store %arg4[%c0_8, %c0_9, %c0_10], %12 {strides = array<i32>} : memref<1x8x2xf32, #tpu.memory_space<vmem>>, vector<1x8x1xf32>,
    %13 = arith.mulf %3, %3 : vector<8x256xf32>
    %cst_11 = arith.constant dense<0.000000e+00> : vector<8xf32>
    %14 = vector.multi_reduction <add>, %13, %cst_11 [1] : vector<8x256xf32> to vector<8xf32>
    %15 = vector.shape_cast %14 : vector<8xf32> to vector<8x1xf32>
    %c0_12 = arith.constant 0 : index
    %c0_13 = arith.constant 0 : index
    %c1 = arith.constant 1 : index
    %16 = vector.load %arg4[%c0_12, %c0_13, %c1] : memref<1x8x2xf32, #tpu.memory_space<vmem>>, vector<1x8x1xf32>
    %17 = vector.shape_cast %16 : vector<1x8x1xf32> to vector<8x1xf32>
    %18 = vector.shape_cast %15 : vector<8x1xf32> to vector<1x8x1xf32>
    tpu.vector_store %arg4[%c0_12, %c0_13, %c1], %18 {strides = array<i32>} : memref<1x8x2xf32, #tpu.memory_space<vmem>>, vector<1x8x1xf32>,
    return
  }
  func.func @transform_0(%arg0: i32) -> (i32, i32, i32) {
    %c0_i32 = arith.constant 0 : i32
    %c0_i32_0 = arith.constant 0 : i32
    %c0_i32_1 = arith.constant 0 : i32
    return %arg0, %c0_i32, %c0_i32_0 : i32, i32, i32
  }
  func.func @transform_1(%arg0: i32) -> (i32, i32) {
    %c0_i32 = arith.constant 0 : i32
    %c0_i32_0 = arith.constant 0 : i32
    %c0_i32_1 = arith.constant 0 : i32
    return %c0_i32, %c0_i32_0 : i32, i32
  }
  func.func @transform_2(%arg0: i32) -> (i32, i32, i32) {
    %c0_i32 = arith.constant 0 : i32
    %c0_i32_0 = arith.constant 0 : i32
    %c0_i32_1 = arith.constant 0 : i32
    return %arg0, %c0_i32, %c0_i32_0 : i32, i32, i32
  }
  func.func @transform_3(%arg0: i32) -> (i32, i32, i32) {
    %c0_i32 = arith.constant 0 : i32
    %c0_i32_0 = arith.constant 0 : i32
    %c0_i32_1 = arith.constant 0 : i32
    return %arg0, %c0_i32, %c0_i32_0 : i32, i32, i32
  }
}

module attributes {stable_mosaic.version = 11 : i64} {
  func.func @_conv3x3_stats_kernel(%arg0: i32, %arg1: memref<1x72x256xbf16, #tpu.memory_space<vmem>>, %arg2: memref<8x72xbf16, #tpu.memory_space<vmem>>, %arg3: memref<1x8x256xbf16, #tpu.memory_space<vmem>>, %arg4: memref<1x8x2xf32, #tpu.memory_space<vmem>>) attributes {dimension_semantics = [#tpu.dimension_semantics<parallel>], iteration_bounds = array<i64: 2>, scalar_prefetch = 0 : i64, scratch_operands = 0 : i64, tpu.core_type = #tpu.core_type<tc>, window_params = [{transform_indices = @transform_0, window_bounds = array<i64: 1, 72, 256>}, {pipeline_mode = #tpu.pipeline_mode<synchronous>, transform_indices = @transform_1, window_bounds = array<i64: 8, 72>}, {transform_indices = @transform_2, window_bounds = array<i64: 1, 8, 256>}, {transform_indices = @transform_3, window_bounds = array<i64: 1, 8, 2>}]} {
    %c0 = arith.constant 0 : index
    %c0_0 = arith.constant 0 : index
    %0 = vector.load %arg2[%c0, %c0_0] : memref<8x72xbf16, #tpu.memory_space<vmem>>, vector<8x72xbf16>
    %c0_1 = arith.constant 0 : index
    %c0_2 = arith.constant 0 : index
    %c0_3 = arith.constant 0 : index
    %1 = vector.load %arg1[%c0_1, %c0_2, %c0_3] : memref<1x72x256xbf16, #tpu.memory_space<vmem>>, vector<1x72x256xbf16>
    %2 = vector.shape_cast %1 : vector<1x72x256xbf16> to vector<72x256xbf16>
    %cst = arith.constant dense<0.000000e+00> : vector<8x256xf32>
    %3 = tpu.matmul %0, %2, %cst {dimension_numbers = #tpu.dot_dimension_numbers<[1], [0], [0], [1], [0, 0, 1, 1], [], []>} : vector<8x72xbf16>, vector<72x256xbf16>, vector<8x256xf32> -> vector<8x256xf32>
    %4 = arith.truncf %3 : vector<8x256xf32> to vector<8x256xbf16>
    %c0_4 = arith.constant 0 : index
    %c0_5 = arith.constant 0 : index
    %c0_6 = arith.constant 0 : index
    %5 = vector.load %arg3[%c0_4, %c0_5, %c0_6] : memref<1x8x256xbf16, #tpu.memory_space<vmem>>, vector<1x8x256xbf16>
    %6 = vector.shape_cast %5 : vector<1x8x256xbf16> to vector<8x256xbf16>
    %7 = vector.shape_cast %4 : vector<8x256xbf16> to vector<1x8x256xbf16>
    tpu.vector_store %arg3[%c0_4, %c0_5, %c0_6], %7 {strides = array<i32>} : memref<1x8x256xbf16, #tpu.memory_space<vmem>>, vector<1x8x256xbf16>,
    %cst_7 = arith.constant dense<0.000000e+00> : vector<8xf32>
    %8 = vector.multi_reduction <add>, %3, %cst_7 [1] : vector<8x256xf32> to vector<8xf32>
    %9 = vector.shape_cast %8 : vector<8xf32> to vector<8x1xf32>
    %c0_8 = arith.constant 0 : index
    %c0_9 = arith.constant 0 : index
    %c0_10 = arith.constant 0 : index
    %10 = vector.load %arg4[%c0_8, %c0_9, %c0_10] : memref<1x8x2xf32, #tpu.memory_space<vmem>>, vector<1x8x1xf32>
    %11 = vector.shape_cast %10 : vector<1x8x1xf32> to vector<8x1xf32>
    %12 = vector.shape_cast %9 : vector<8x1xf32> to vector<1x8x1xf32>
    tpu.vector_store %arg4[%c0_8, %c0_9, %c0_10], %12 {strides = array<i32>} : memref<1x8x2xf32, #tpu.memory_space<vmem>>, vector<1x8x1xf32>,
    %13 = arith.mulf %3, %3 : vector<8x256xf32>
    %cst_11 = arith.constant dense<0.000000e+00> : vector<8xf32>
    %14 = vector.multi_reduction <add>, %13, %cst_11 [1] : vector<8x256xf32> to vector<8xf32>
    %15 = vector.shape_cast %14 : vector<8xf32> to vector<8x1xf32>
    %c0_12 = arith.constant 0 : index
    %c0_13 = arith.constant 0 : index
    %c1 = arith.constant 1 : index
    %16 = vector.load %arg4[%c0_12, %c0_13, %c1] : memref<1x8x2xf32, #tpu.memory_space<vmem>>, vector<1x8x1xf32>
    %17 = vector.shape_cast %16 : vector<1x8x1xf32> to vector<8x1xf32>
    %18 = vector.shape_cast %15 : vector<8x1xf32> to vector<1x8x1xf32>
    tpu.vector_store %arg4[%c0_12, %c0_13, %c1], %18 {strides = array<i32>} : memref<1x8x2xf32, #tpu.memory_space<vmem>>, vector<1x8x1xf32>,
    return
  }
  func.func @transform_0(%arg0: i32) -> (i32, i32, i32) {
    %c0_i32 = arith.constant 0 : i32
    %c0_i32_0 = arith.constant 0 : i32
    %c0_i32_1 = arith.constant 0 : i32
    return %arg0, %c0_i32, %c0_i32_0 : i32, i32, i32
  }
  func.func @transform_1(%arg0: i32) -> (i32, i32) {
    %c0_i32 = arith.constant 0 : i32
    %c0_i32_0 = arith.constant 0 : i32
    %c0_i32_1 = arith.constant 0 : i32
    return %c0_i32, %c0_i32_0 : i32, i32
  }
  func.func @transform_2(%arg0: i32) -> (i32, i32, i32) {
    %c0_i32 = arith.constant 0 : i32
    %c0_i32_0 = arith.constant 0 : i32
    %c0_i32_1 = arith.constant 0 : i32
    return %arg0, %c0_i32, %c0_i32_0 : i32, i32, i32
  }
  func.func @transform_3(%arg0: i32) -> (i32, i32, i32) {
    %c0_i32 = arith.constant 0 : i32
    %c0_i32_0 = arith.constant 0 : i32
    %c0_i32_1 = arith.constant 0 : i32
    return %arg0, %c0_i32, %c0_i32_0 : i32, i32, i32
  }
}

</mosaic_0001>

<bundles_post_ra>
// kernel: up_forward.2
= control target key start
LH: loop header
LB: loop body
LE: loop exit
PB: predicated region body
PF: predicated region fallthrough
CT: control target
= control target key end

     0   :  { %s551_s12 = smov 0   ;;  %s598_s0 = inlined_call_operand.vmem [shape: bf16[2,144,256], index: 0, kind: input, shape index: {}]   ;;  %s599_s1 = inlined_call_operand.vmem [shape: bf16[8,144], index: 1, kind: input, shape index: {}]   ;;  %s600_s2 = inlined_call_operand.vmem [shape: bf16[2,8,256], index: 2, kind: output, shape index: {0}]   ;;  %s601_s3 = inlined_call_operand.vmem [shape: f32[2,8,2], index: 3, kind: output, shape index: {1}]  }
   0x1 LB: > { %s450_s13 = sadd.s32 4294967295, %s529_s12   ;;  %p454_p0 = scmp.ge.s32.totalorder %s529_s12, 1  ;;  %s529_s12 = sphi %s551_s12, %s14_s12  }
   0x2   : > { %p140_p1 = scmp.lt.s32.totalorder %s529_s12, 3 }
   0x4   : > { %p141_p2 = pnand %p454_p0, %p140_p1 }
   0x5   : > { %p168_p3 = scmp.lt.s32.totalorder (!%p141_p2), %s450_s13, 1  ;;  %v183_v0 = vld [vmem:[%s599_s1] sm:$0xff] (!%p141_p2)  ;;  %vm298_vm0 = vcmask (!%p141_p2), 130048   ;;  %vm355_vm1 = vcmask (!%p141_p2), 7168   ;;  %vm362_vm2 = vcmask (!%p141_p2), 15368  }
   0x6   : > { %144 = sbr.rel (%p141_p2) target bundleno = 416 (0x1a0), region = 28  ;;  %v460_v1 = vcombine.high (!%p141_p2), %v183_v0, %v183_v0  ;;  %v459_v20 = vcombine.low (!%p141_p2), %v183_v0, %v183_v0 }
   0x8   : > { %479 = vmatprep.mubr.msk.bf16.mxu0 (!%p141_p2), %vm298_vm0, %v460_v1 }
   0xd   : > { %s603_s13 = smov (!%p168_p3, %s450_s13), 1 }
   0xe   : > { %s485_s16 = smul.u32 144, %s603_s13  ;;  %s483_s20 = sshll.u32 %s603_s13, 3 }
   0xf   : > { %s177_s23 = scalar_lea.vmem %s600_s2, %s483_s20  ;;  %s181_s26 = scalar_lea.vmem %s601_s3, %s483_s20 }
  0x10   : > { %s568_s19 = scalar_lea.vmem %s598_s0, %s485_s16 }
  0x11   : > { %v494_v2 = vld [vmem:[%s568_s19 + $0x4] ss:$8 sps:$4 sm:$0xff]   ;;  %v496_v3 = vld [vmem:[%s568_s19] ss:$8 sps:$4 sm:$0xff]   ;;  %v497_v4 = vld [vmem:[%s568_s19 + $0x14] ss:$8 sps:$4 sm:$0xff]  }
  0x12   : > { %302 = vmatprep.subr.bf16.mxu0 %v494_v2  ;;  %v499_v5 = vld [vmem:[%s568_s19 + $0x10] ss:$8 sps:$4 sm:$0xff]   ;;  %v500_v6 = vld [vmem:[%s568_s19 + $0x24] ss:$8 sps:$4 sm:$0xff]   ;;  %v502_v7 = vld [vmem:[%s568_s19 + $0x20] ss:$8 sps:$4 sm:$0xff]  }
  0x13   : > { %303 = vmatpush1.bf16.msra.mxu0 %v496_v3  ;;  %v503_v8 = vld [vmem:[%s568_s19 + $0x34] ss:$8 sps:$4 sm:$0xff]   ;;  %v505_v9 = vld [vmem:[%s568_s19 + $0x30] ss:$8 sps:$4 sm:$0xff]   ;;  %v506_v10 = vld [vmem:[%s568_s19 + $0x44] ss:$8 sps:$4 sm:$0xff]  }
  0x14   : > { %304 = vmatprep.subr.bf16.mxu0 %v497_v4  ;;  %v508_v11 = vld [vmem:[%s568_s19 + $0x40] ss:$8 sps:$4 sm:$0xff]   ;;  %v509_v12 = vld [vmem:[%s568_s19 + $0x54] ss:$8 sps:$4 sm:$0xff]   ;;  %v511_v13 = vld [vmem:[%s568_s19 + $0x50] ss:$8 sps:$4 sm:$0xff]  }
  0x15   : > { %v512_v14 = vld [vmem:[%s568_s19 + $0x64] ss:$8 sps:$4 sm:$0xff]   ;;  %v514_v15 = vld [vmem:[%s568_s19 + $0x60] ss:$8 sps:$4 sm:$0xff]   ;;  %v515_v16 = vld [vmem:[%s568_s19 + $0x74] ss:$8 sps:$4 sm:$0xff]  }
  0x16   : > { %v517_v17 = vld [vmem:[%s568_s19 + $0x70] ss:$8 sps:$4 sm:$0xff]   ;;  %v518_v18 = vld [vmem:[%s568_s19 + $0x84] ss:$8 sps:$4 sm:$0xff]   ;;  %v520_v19 = vld [vmem:[%s568_s19 + $0x80] ss:$8 sps:$4 sm:$0xff]  }
  0x17   : > { %305 = vmatpush1.bf16.msra.mxu0 %v499_v5 }
  0x18   : > { %306 = vmatprep.subr.bf16.mxu0 %v500_v6 }
  0x1b   : > { %307 = vmatpush1.bf16.msra.mxu0 %v502_v7 }
  0x1c   : > { %308 = vmatprep.subr.bf16.mxu0 %v503_v8 }
  0x1f   : > { %309 = vmatpush1.bf16.msra.mxu0 %v505_v9 }
  0x20   : > { %310 = vmatprep.subr.bf16.mxu0 %v506_v10 }
  0x23   : > { %311 = vmatpush1.bf16.msra.mxu0 %v508_v11 }
  0x24   : > { %312 = vmatprep.subr.bf16.mxu0 %v509_v12 }
  0x27   : > { %313 = vmatpush1.bf16.msra.mxu0 %v511_v13 }
  0x28   : > { %314 = vmatprep.subr.bf16.mxu0 %v512_v14 }
  0x2b   : > { %315 = vmatpush1.bf16.msra.mxu0 %v514_v15 }
  0x2c   : > { %316 = vmatprep.subr.bf16.mxu0 %v515_v16 }
  0x2f   : > { %317 = vmatpush1.bf16.msra.mxu0 %v517_v17 }
  0x30   : > { %318 = vmatprep.subr.bf16.mxu0 %v518_v18 }
  0x33   : > { %319 = vmatpush1.bf16.msra.mxu0 %v520_v19 }
  0x36   : > { %335 = vmatmul.mubr.bf16.vlgmr.msra.gmra.mrb[0].mxu0 %v459_v20 }
 0x109   : > { %v336_v21 = vpop.f32.mrb[0].mxu0 }
 0x10a   : > { %v338_v22 = vpop.f32.mrb[1].mxu0  ;;  %v357_v23 = vmul.f32 %v336_v21, %v336_v21 }
 0x10b   : > { %v484_v24 = vpack.c.bf16 %v338_v22, %v336_v21  ;;  %v340_v25 = vpop.f32.mrb[2].mxu0  ;;  %v352_v26 = vadd.f32 %v338_v22, %v336_v21  ;;  %v358_v27 = vmul.f32 %v338_v22, %v338_v22 }
 0x10c   : > { %v341_v28 = vpop.f32.mrb[3].mxu0 }
 0x10d   : > { %353 = vadd.xlane.f32.xlu0 %v352_v26  ;;  %v359_v29 = vadd.f32 %v358_v27, %v357_v23  ;;  %351 = vst [vmem:[%s177_s23] sm:$0xff] %v484_v24 }
 0x111   : > { %360 = vadd.xlane.f32.xlu0 %v359_v29 }
 0x19a   : > { %v354_v30 = vpop.xlane.xlu0 %353 }
 0x19b   : > { %356 = vst.msk [vmem:[%s181_s26] sm:$0xff] %vm355_vm1, %v354_v30 }
 0x19e   : > { %v361_v31 = vpop.xlane.xlu0 %360 }
 0x19f   : > { %363 = vst.msk [vmem:[%s181_s26] sm:$0xff] %vm362_vm2, %v361_v31 }
 0x1a0 PF: > { %s14_s12 = sadd.s32 1, %s529_s12  }
 0x1a1   : > { %p11_p4 = scmp.ge.s32.totalorder %s14_s12, 4  }
 0x1a3   :  { %13 = sbr.rel (!%p11_p4) target bundleno = 1 (0x1), region = 70 }

// kernel: up_forward.3
= control target key start
LH: loop header
LB: loop body
LE: loop exit
PB: predicated region body
PF: predicated region fallthrough
CT: control target
= control target key end

     0   :  { %s476_s12 = smov 0   ;;  %s503_s0 = inlined_call_operand.vmem [shape: bf16[2,72,256], index: 0, kind: input, shape index: {}]   ;;  %s504_s1 = inlined_call_operand.vmem [shape: bf16[8,72], index: 1, kind: input, shape index: {}]   ;;  %s505_s2 = inlined_call_operand.vmem [shape: bf16[2,8,256], index: 2, kind: output, shape index: {0}]   ;;  %s506_s3 = inlined_call_operand.vmem [shape: f32[2,8,2], index: 3, kind: output, shape index: {1}]  }
   0x1 LB: > { %s397_s13 = sadd.s32 4294967295, %s453_s12   ;;  %p401_p0 = scmp.ge.s32.totalorder %s453_s12, 1  ;;  %s453_s12 = sphi %s476_s12, %s14_s12  }
   0x2   : > { %p140_p1 = scmp.lt.s32.totalorder %s453_s12, 3 }
   0x4   : > { %p141_p2 = pnand %p401_p0, %p140_p1 }
   0x5   : > { %p168_p3 = scmp.lt.s32.totalorder (!%p141_p2), %s397_s13, 1  ;;  %v455_v0 = vmov (!%p141_p2), 0   ;;  %vm242_vm0 = vcmask (!%p141_p2), 1043456   ;;  %v183_v13 = vld [vmem:[%s504_s1] sm:$0xf] (!%p141_p2)  ;;  %vm238_vm1 = vcmask (!%p141_p2), 588800  }
   0x6   : > { %144 = sbr.rel (%p141_p2) target bundleno = 400 (0x190), region = 28  ;;  %281 = vmatprep.mubr.bf16.mxu0 (!%p141_p2), %v455_v0  ;;  %vm302_vm2 = vcmask (!%p141_p2), 7168   ;;  %vm309_vm3 = vcmask (!%p141_p2), 15368  }
   0xd   : > { %s508_s13 = smov (!%p168_p3, %s397_s13), 1 }
   0xe   : > { %s423_s14 = smul.u32 72, %s508_s13  ;;  %s421_s20 = sshll.u32 %s508_s13, 3 }
   0xf   : > { %s177_s23 = scalar_lea.vmem %s505_s2, %s421_s20  ;;  %s181_s26 = scalar_lea.vmem %s506_s3, %s421_s20 }
  0x10   : > { %s172_s17 = scalar_lea.vmem %s503_s0, %s423_s14 }
  0x11   : > { %v433_v1 = vld [vmem:[%s172_s17 + $0x4] ss:$8 sps:$4 sm:$0xff]   ;;  %v435_v2 = vld [vmem:[%s172_s17] ss:$8 sps:$4 sm:$0xff]   ;;  %v436_v3 = vld [vmem:[%s172_s17 + $0x14] ss:$8 sps:$4 sm:$0xff]  }
  0x12   : > { %249 = vmatprep.subr.bf16.mxu0 %v433_v1  ;;  %v438_v4 = vld [vmem:[%s172_s17 + $0x10] ss:$8 sps:$4 sm:$0xff]   ;;  %v439_v5 = vld [vmem:[%s172_s17 + $0x24] ss:$8 sps:$4 sm:$0xff]   ;;  %v441_v6 = vld [vmem:[%s172_s17 + $0x20] ss:$8 sps:$4 sm:$0xff]  }
  0x13   : > { %250 = vmatpush1.bf16.msra.mxu0 %v435_v2  ;;  %v442_v7 = vld [vmem:[%s172_s17 + $0x34] ss:$8 sps:$4 sm:$0xff]   ;;  %v192_v8 = vld [vmem:[%s172_s17 + $0x40] sm:$0xff]  ;;  %v444_v9 = vld [vmem:[%s172_s17 + $0x30] ss:$8 sps:$4 sm:$0xff]  }
  0x14   : > { %251 = vmatprep.subr.bf16.mxu0 %v436_v3  ;;  %v415_v10 = vcombine.high %v192_v8, %v192_v8  ;;  %v414_v11 = vcombine.low %v192_v8, %v192_v8 }
  0x16   : > { %v244_v12 = vsel %vm242_vm0, %v414_v11, 0 }
  0x17   : > { %252 = vmatpush1.bf16.msra.mxu0 %v438_v4 }
  0x18   : > { %253 = vmatprep.subr.bf16.mxu0 %v439_v5 }
  0x1b   : > { %254 = vmatpush1.bf16.msra.mxu0 %v441_v6 }
  0x1c   : > { %255 = vmatprep.subr.bf16.mxu0 %v442_v7 }
  0x1f   : > { %256 = vmatpush1.bf16.msra.mxu0 %v444_v9 }
  0x20   : > { %416 = vmatprep.subr.msk.bf16.mxu0 %vm242_vm0, %v415_v10 }
  0x23   : > { %258 = vmatpush1.bf16.msra.mxu0 %v244_v12 }
  0x26   : > { %417 = vmatmul.mubr.msk.bf16.vlgmr.msra.gmra.mrb[0].mxu0 %vm238_vm1, %v183_v13 }
  0xf9   : > { %v283_v14 = vpop.f32.mrb[0].mxu0 }
  0xfa   : > { %v285_v15 = vpop.f32.mrb[1].mxu0  ;;  %v304_v16 = vmul.f32 %v283_v14, %v283_v14 }
  0xfb   : > { %v422_v17 = vpack.c.bf16 %v285_v15, %v283_v14  ;;  %v287_v18 = vpop.f32.mrb[2].mxu0  ;;  %v299_v19 = vadd.f32 %v285_v15, %v283_v14  ;;  %v305_v20 = vmul.f32 %v285_v15, %v285_v15 }
  0xfc   : > { %v288_v21 = vpop.f32.mrb[3].mxu0 }
  0xfd   : > { %300 = vadd.xlane.f32.xlu0 %v299_v19  ;;  %v306_v22 = vadd.f32 %v305_v20, %v304_v16  ;;  %298 = vst [vmem:[%s177_s23] sm:$0xff] %v422_v17 }
 0x101   : > { %307 = vadd.xlane.f32.xlu0 %v306_v22 }
 0x18a   : > { %v301_v23 = vpop.xlane.xlu0 %300 }
 0x18b   : > { %303 = vst.msk [vmem:[%s181_s26] sm:$0xff] %vm302_vm2, %v301_v23 }
 0x18e   : > { %v308_v24 = vpop.xlane.xlu0 %307 }
 0x18f   : > { %310 = vst.msk [vmem:[%s181_s26] sm:$0xff] %vm309_vm3, %v308_v24 }
 0x190 PF: > { %s14_s12 = sadd.s32 1, %s453_s12  }
 0x191   : > { %p11_p4 = scmp.ge.s32.totalorder %s14_s12, 4  }
 0x193   :  { %13 = sbr.rel (!%p11_p4) target bundleno = 1 (0x1), region = 70 }

</bundles_post_ra>
